<compile_context>
chip_gen: v7x
topology: tpu7x:2x2x1
jax: 0.10.0
libtpu: 0.0.40
codegen_flags: <defaults>
</compile_context>

<pallas_src>
import jax
import jax.numpy as jnp
import numpy as np
from jax.experimental import pallas as pl
from jax.experimental.pallas import tpu as pltpu


# ---------------------------------------------------------------------------
# Fused kernel: conv1+tanh+tanh -> (pad + stride-2 select) -> conv2+tanh
#               -> conv3+tanh, all in one straight-line body.
# Shapes (per batch element):
#   x_ref    : (HW, C)   real input pixels, channels-last
#   w*_ref   : (C, C)    1x1 conv weights, laid out (Cin, Cout)
#   b*_ref   : (1, C)
#   ring_ref : (S, 1)    1.0 where a selected stride-2 pixel lands on conv1's
#                        zero-pad ring (value there is tanh(tanh(b1)))
#   gath_ref : (S, HW)   one-hot rows selecting which real pixel feeds each
#                        selected stride-2 position (all-zero row => that
#                        position sits on conv2's zero padding)
#   o_ref    : (S, C)    S = H3*W3 output pixels of the final conv/tanh
# ---------------------------------------------------------------------------
def _fused_model_tanh_kernel(x_ref, w1_ref, b1_ref, w2_ref, b2_ref,
                             w3_ref, b3_ref, ring_ref, gath_ref, o_ref):
    f32 = jnp.float32
    HW, C = x_ref.shape
    S = ring_ref.shape[0]

    # ---- stage 1: conv1 (1x1) + bias + tanh + tanh, real pixels only -----
    b1 = b1_ref[...]                                               # (1, C)
    y1 = jnp.tanh(jnp.tanh(
        jnp.dot(x_ref[...], w1_ref[...], preferred_element_type=f32) + b1))
    const1 = jnp.tanh(jnp.tanh(b1))           # conv1 output on its pad ring

    # ---- build conv2's input only at the stride-2 positions conv3 keeps --
    #   u[s] = y1[src(s)]     if position s maps to a real pixel
    #        = tanh(tanh(b1)) if it lands on conv1's zero-pad ring
    #        = 0              if it lands on conv2's zero padding
    sc = (S, C)
    u = jnp.broadcast_to(ring_ref[...], sc) * jnp.broadcast_to(const1, sc)
    g = gath_ref[...]                                              # (S, HW)
    for q in range(HW):              # trace-time loop; HW is tiny here (=1)
        u = u + (jnp.broadcast_to(g[:, q:q + 1], sc) *
                 jnp.broadcast_to(y1[q:q + 1, :], sc))

    # ---- stage 2: conv2 (1x1) + bias + tanh ------------------------------
    y2 = jnp.tanh(
        jnp.dot(u, w2_ref[...], preferred_element_type=f32) + b2_ref[...])

    # ---- stage 3: conv3 (1x1; stride-2 handled by the selection) + tanh --
    y3 = jnp.tanh(
        jnp.dot(y2, w3_ref[...], preferred_element_type=f32) + b3_ref[...])

    o_ref[...] = y3.astype(o_ref.dtype)


# ---------------------------------------------------------------------------
# Host-side (trace-time) geometry constants: classify each stride-2 position
# of the doubly padded (H+4, W+4) grid that conv3 reads.
# ---------------------------------------------------------------------------
def _build_selection_masks(H, W):
    H2, W2 = H + 4, W + 4
    H3, W3 = (H2 - 1) // 2 + 1, (W2 - 1) // 2 + 1
    S, HW = H3 * W3, H * W
    ring = np.zeros((S, 1), np.float32)
    gath = np.zeros((S, HW), np.float32)
    for i in range(H3):
        for j in range(W3):
            s = i * W3 + j
            r, c = 2 * i, 2 * j
            if 2 <= r <= H + 1 and 2 <= c <= W + 1:        # a real pixel
                gath[s, (r - 2) * W + (c - 2)] = 1.0
            elif 1 <= r <= H + 2 and 1 <= c <= W + 2:      # conv1 pad ring
                ring[s, 0] = 1.0
            # else: conv2 zero padding -> stays 0 in both masks
    return ring, gath, H3, W3


# ---------------------------------------------------------------------------
# Forward pass matching ModelTanh (one fused pallas_call)
# ---------------------------------------------------------------------------
@jax.jit
def model_tanh_forward(x_nchw, params):
    w1, b1, w2, b2, w3, b3 = params
    N, C, H, W = x_nchw.shape
    ring, gath, H3, W3 = _build_selection_masks(H, W)
    S, HW = H3 * W3, H * W

    # single layout conversion NCHW -> channels-last pixel slab
    x_slab = jnp.transpose(x_nchw, (0, 2, 3, 1)).reshape(N, HW, C)

    out = pl.pallas_call(
        _fused_model_tanh_kernel,
        out_shape=jax.ShapeDtypeStruct((N, S, C), jnp.float32),
        grid=(N,),
        in_specs=[
            pl.BlockSpec((None, HW, C), lambda n: (n, 0, 0)),   # x (per image)
            pl.BlockSpec((C, C), lambda n: (0, 0)),             # w1
            pl.BlockSpec((1, C), lambda n: (0, 0)),             # b1
            pl.BlockSpec((C, C), lambda n: (0, 0)),             # w2
            pl.BlockSpec((1, C), lambda n: (0, 0)),             # b2
            pl.BlockSpec((C, C), lambda n: (0, 0)),             # w3
            pl.BlockSpec((1, C), lambda n: (0, 0)),             # b3
            pl.BlockSpec((S, 1), lambda n: (0, 0)),             # ring mask
            pl.BlockSpec((S, HW), lambda n: (0, 0)),            # gather mask
        ],
        out_specs=pl.BlockSpec((None, S, C), lambda n: (n, 0, 0)),
        compiler_params=pltpu.CompilerParams(
            dimension_semantics=("parallel",)),   # batch axis -> 2 TCs on v7x
    )(x_slab, w1, b1, w2, b2, w3, b3, jnp.asarray(ring), jnp.asarray(gath))

    # back to the PyTorch NCHW convention (single boundary transpose)
    return jnp.transpose(out.reshape(N, H3, W3, C), (0, 3, 1, 2))


# ---------------------------------------------------------------------------
# Pure-JAX reference (lax conv) for correctness checking
# ---------------------------------------------------------------------------
def _ref_forward(x, params):
    w1, b1, w2, b2, w3, b3 = params

    def conv(x, w_cin_cout, b, padding, stride, dilation):
        w_oihw = w_cin_cout.T.reshape(w_cin_cout.shape[1], w_cin_cout.shape[0], 1, 1)
        y = jax.lax.conv_general_dilated(
            x, w_oihw, window_strides=(stride, stride),
            padding=((padding, padding), (padding, padding)),
            rhs_dilation=(dilation, dilation),
            dimension_numbers=("NCHW", "OIHW", "NCHW"))
        return y + b.reshape(1, -1, 1, 1)

    x1 = conv(x, w1, b1[0], padding=1, stride=1, dilation=2)
    x3 = jnp.tanh(jnp.tanh(x1))
    x4 = conv(x3, w2, b2[0], padding=1, stride=1, dilation=1)
    x5 = jnp.tanh(x4)
    x6 = conv(x5, w3, b3[0], padding=0, stride=2, dilation=1)
    return jnp.tanh(x6)


# ---------------------------------------------------------------------------
def init_params(key, c_in=32, c_out=32):
    """Deterministic PyTorch-style uniform(-1/sqrt(fan_in), 1/sqrt(fan_in))."""
    params = []
    bound = 1.0 / np.sqrt(c_in * 1 * 1)
    for _ in range(3):
        kw, kb, key = jax.random.split(key, 3)
        w = jax.random.uniform(kw, (c_in, c_out), jnp.float32, -bound, bound)
        b = jax.random.uniform(kb, (1, c_out), jnp.float32, -bound, bound)
        params += [w, b]
    return tuple(params)


if __name__ == "__main__":
    key = jax.random.PRNGKey(0)
    kx, kp = jax.random.split(key)

    # Input shape implied by the module: (1, 32, 1, 1) NCHW.
    x = jax.random.normal(kx, (1, 32, 1, 1), jnp.float32)
    params = init_params(kp)

    out = jax.block_until_ready(model_tanh_forward(x, params))
    assert out.shape == (1, 32, 3, 3), out.shape

    ref = jax.block_until_ready(_ref_forward(x, params))
    np.testing.assert_allclose(np.asarray(out), np.asarray(ref), atol=1e-5, rtol=1e-5)

    print("KERNEL_OK")
</pallas_src>

<mosaic_0001>
module attributes {stable_mosaic.version = 11 : i64} {
  func.func @_fused_model_tanh_kernel(%arg0: i32, %arg1: memref<1x1x32xf32, #tpu.memory_space<vmem>>, %arg2: memref<32x32xf32, #tpu.memory_space<vmem>>, %arg3: memref<1x32xf32, #tpu.memory_space<vmem>>, %arg4: memref<32x32xf32, #tpu.memory_space<vmem>>, %arg5: memref<1x32xf32, #tpu.memory_space<vmem>>, %arg6: memref<32x32xf32, #tpu.memory_space<vmem>>, %arg7: memref<1x32xf32, #tpu.memory_space<vmem>>, %arg8: memref<9x1xf32, #tpu.memory_space<vmem>>, %arg9: memref<9x1xf32, #tpu.memory_space<vmem>>, %arg10: memref<1x9x32xf32, #tpu.memory_space<vmem>>) attributes {dimension_semantics = [#tpu.dimension_semantics<parallel>], iteration_bounds = array<i64: 1>, scalar_prefetch = 0 : i64, scratch_operands = 0 : i64, tpu.core_type = #tpu.core_type<tc>, window_params = [{transform_indices = @transform_0, window_bounds = array<i64: 1, 1, 32>}, {pipeline_mode = #tpu.pipeline_mode<synchronous>, transform_indices = @transform_1, window_bounds = array<i64: 32, 32>}, {pipeline_mode = #tpu.pipeline_mode<synchronous>, transform_indices = @transform_2, window_bounds = array<i64: 1, 32>}, {pipeline_mode = #tpu.pipeline_mode<synchronous>, transform_indices = @transform_3, window_bounds = array<i64: 32, 32>}, {pipeline_mode = #tpu.pipeline_mode<synchronous>, transform_indices = @transform_4, window_bounds = array<i64: 1, 32>}, {pipeline_mode = #tpu.pipeline_mode<synchronous>, transform_indices = @transform_5, window_bounds = array<i64: 32, 32>}, {pipeline_mode = #tpu.pipeline_mode<synchronous>, transform_indices = @transform_6, window_bounds = array<i64: 1, 32>}, {pipeline_mode = #tpu.pipeline_mode<synchronous>, transform_indices = @transform_7, window_bounds = array<i64: 9, 1>}, {pipeline_mode = #tpu.pipeline_mode<synchronous>, transform_indices = @transform_8, window_bounds = array<i64: 9, 1>}, {transform_indices = @transform_9, window_bounds = array<i64: 1, 9, 32>}]} {
    %c0 = arith.constant 0 : index
    %c0_0 = arith.constant 0 : index
    %0 = vector.load %arg3[%c0, %c0_0] : memref<1x32xf32, #tpu.memory_space<vmem>>, vector<1x32xf32>
    %c0_1 = arith.constant 0 : index
    %c0_2 = arith.constant 0 : index
    %c0_3 = arith.constant 0 : index
    %1 = vector.load %arg1[%c0_1, %c0_2, %c0_3] : memref<1x1x32xf32, #tpu.memory_space<vmem>>, vector<1x1x32xf32>
    %2 = vector.shape_cast %1 : vector<1x1x32xf32> to vector<1x32xf32>
    %c0_4 = arith.constant 0 : index
    %c0_5 = arith.constant 0 : index
    %3 = vector.load %arg2[%c0_4, %c0_5] : memref<32x32xf32, #tpu.memory_space<vmem>>, vector<32x32xf32>
    %cst = arith.constant dense<0.000000e+00> : vector<1x32xf32>
    %4 = tpu.matmul %2, %3, %cst {dimension_numbers = #tpu.dot_dimension_numbers<[1], [0], [0], [1], [0, 0, 1, 1], [], []>} : vector<1x32xf32>, vector<32x32xf32>, vector<1x32xf32> -> vector<1x32xf32>
    %5 = arith.addf %4, %0 : vector<1x32xf32>
    %6 = math.tanh %5 : vector<1x32xf32>
    %7 = math.tanh %6 : vector<1x32xf32>
    %8 = math.tanh %0 : vector<1x32xf32>
    %9 = math.tanh %8 : vector<1x32xf32>
    %c0_6 = arith.constant 0 : index
    %c0_7 = arith.constant 0 : index
    %10 = vector.load %arg8[%c0_6, %c0_7] : memref<9x1xf32, #tpu.memory_space<vmem>>, vector<9x1xf32>
    %11 = vector.shape_cast %10 : vector<9x1xf32> to vector<9x1xf32>
    %12 = vector.broadcast %11 : vector<9x1xf32> to vector<9x32xf32>
    %13 = vector.shape_cast %9 : vector<1x32xf32> to vector<1x32xf32>
    %14 = vector.broadcast %13 : vector<1x32xf32> to vector<9x32xf32>
    %15 = arith.mulf %12, %14 : vector<9x32xf32>
    %c0_8 = arith.constant 0 : index
    %c0_9 = arith.constant 0 : index
    %16 = vector.load %arg9[%c0_8, %c0_9] : memref<9x1xf32, #tpu.memory_space<vmem>>, vector<9x1xf32>
    %17 = vector.shape_cast %16 : vector<9x1xf32> to vector<9x1xf32>
    %18 = vector.broadcast %17 : vector<9x1xf32> to vector<9x32xf32>
    %19 = vector.shape_cast %7 : vector<1x32xf32> to vector<1x32xf32>
    %20 = vector.broadcast %19 : vector<1x32xf32> to vector<9x32xf32>
    %21 = arith.mulf %18, %20 : vector<9x32xf32>
    %22 = arith.addf %15, %21 : vector<9x32xf32>
    %c0_10 = arith.constant 0 : index
    %c0_11 = arith.constant 0 : index
    %23 = vector.load %arg4[%c0_10, %c0_11] : memref<32x32xf32, #tpu.memory_space<vmem>>, vector<32x32xf32>
    %cst_12 = arith.constant dense<0.000000e+00> : vector<9x32xf32>
    %24 = tpu.matmul %22, %23, %cst_12 {dimension_numbers = #tpu.dot_dimension_numbers<[1], [0], [0], [1], [0, 0, 1, 1], [], []>} : vector<9x32xf32>, vector<32x32xf32>, vector<9x32xf32> -> vector<9x32xf32>
    %c0_13 = arith.constant 0 : index
    %c0_14 = arith.constant 0 : index
    %25 = vector.load %arg5[%c0_13, %c0_14] : memref<1x32xf32, #tpu.memory_space<vmem>>, vector<1x32xf32>
    %26 = vector.broadcast %25 : vector<1x32xf32> to vector<9x32xf32>
    %27 = arith.addf %24, %26 : vector<9x32xf32>
    %28 = math.tanh %27 : vector<9x32xf32>
    %c0_15 = arith.constant 0 : index
    %c0_16 = arith.constant 0 : index
    %29 = vector.load %arg6[%c0_15, %c0_16] : memref<32x32xf32, #tpu.memory_space<vmem>>, vector<32x32xf32>
    %cst_17 = arith.constant dense<0.000000e+00> : vector<9x32xf32>
    %30 = tpu.matmul %28, %29, %cst_17 {dimension_numbers = #tpu.dot_dimension_numbers<[1], [0], [0], [1], [0, 0, 1, 1], [], []>} : vector<9x32xf32>, vector<32x32xf32>, vector<9x32xf32> -> vector<9x32xf32>
    %c0_18 = arith.constant 0 : index
    %c0_19 = arith.constant 0 : index
    %31 = vector.load %arg7[%c0_18, %c0_19] : memref<1x32xf32, #tpu.memory_space<vmem>>, vector<1x32xf32>
    %32 = vector.broadcast %31 : vector<1x32xf32> to vector<9x32xf32>
    %33 = arith.addf %30, %32 : vector<9x32xf32>
    %34 = math.tanh %33 : vector<9x32xf32>
    %c0_20 = arith.constant 0 : index
    %c0_21 = arith.constant 0 : index
    %c0_22 = arith.constant 0 : index
    %35 = vector.load %arg10[%c0_20, %c0_21, %c0_22] : memref<1x9x32xf32, #tpu.memory_space<vmem>>, vector<1x9x32xf32>
    %36 = vector.shape_cast %35 : vector<1x9x32xf32> to vector<9x32xf32>
    %37 = vector.shape_cast %34 : vector<9x32xf32> to vector<1x9x32xf32>
    tpu.vector_store %arg10[%c0_20, %c0_21, %c0_22], %37 {strides = array<i32>} : memref<1x9x32xf32, #tpu.memory_space<vmem>>, vector<1x9x32xf32>,
    return
  }
  func.func @transform_0(%arg0: i32) -> (i32, i32, i32) {
    %c0_i32 = arith.constant 0 : i32
    %c0_i32_0 = arith.constant 0 : i32
    %c0_i32_1 = arith.constant 0 : i32
    return %arg0, %c0_i32, %c0_i32_0 : i32, i32, i32
  }
  func.func @transform_1(%arg0: i32) -> (i32, i32) {
    %c0_i32 = arith.constant 0 : i32
    %c0_i32_0 = arith.constant 0 : i32
    %c0_i32_1 = arith.constant 0 : i32
    return %c0_i32, %c0_i32_0 : i32, i32
  }
  func.func @transform_2(%arg0: i32) -> (i32, i32) {
    %c0_i32 = arith.constant 0 : i32
    %c0_i32_0 = arith.constant 0 : i32
    %c0_i32_1 = arith.constant 0 : i32
    return %c0_i32, %c0_i32_0 : i32, i32
  }
  func.func @transform_3(%arg0: i32) -> (i32, i32) {
    %c0_i32 = arith.constant 0 : i32
    %c0_i32_0 = arith.constant 0 : i32
    %c0_i32_1 = arith.constant 0 : i32
    return %c0_i32, %c0_i32_0 : i32, i32
  }
  func.func @transform_4(%arg0: i32) -> (i32, i32) {
    %c0_i32 = arith.constant 0 : i32
    %c0_i32_0 = arith.constant 0 : i32
    %c0_i32_1 = arith.constant 0 : i32
    return %c0_i32, %c0_i32_0 : i32, i32
  }
  func.func @transform_5(%arg0: i32) -> (i32, i32) {
    %c0_i32 = arith.constant 0 : i32
    %c0_i32_0 = arith.constant 0 : i32
    %c0_i32_1 = arith.constant 0 : i32
    return %c0_i32, %c0_i32_0 : i32, i32
  }
  func.func @transform_6(%arg0: i32) -> (i32, i32) {
    %c0_i32 = arith.constant 0 : i32
    %c0_i32_0 = arith.constant 0 : i32
    %c0_i32_1 = arith.constant 0 : i32
    return %c0_i32, %c0_i32_0 : i32, i32
  }
  func.func @transform_7(%arg0: i32) -> (i32, i32) {
    %c0_i32 = arith.constant 0 : i32
    %c0_i32_0 = arith.constant 0 : i32
    %c0_i32_1 = arith.constant 0 : i32
    return %c0_i32, %c0_i32_0 : i32, i32
  }
  func.func @transform_8(%arg0: i32) -> (i32, i32) {
    %c0_i32 = arith.constant 0 : i32
    %c0_i32_0 = arith.constant 0 : i32
    %c0_i32_1 = arith.constant 0 : i32
    return %c0_i32, %c0_i32_0 : i32, i32
  }
  func.func @transform_9(%arg0: i32) -> (i32, i32, i32) {
    %c0_i32 = arith.constant 0 : i32
    %c0_i32_0 = arith.constant 0 : i32
    %c0_i32_1 = arith.constant 0 : i32
    return %arg0, %c0_i32, %c0_i32_0 : i32, i32, i32
  }
}

</mosaic_0001>

<bundles_post_ra>
// kernel: model_tanh_forward.1
= control target key start
LH: loop header
LB: loop body
LE: loop exit
PB: predicated region body
PF: predicated region fallthrough
CT: control target
= control target key end

     0   :  { %14 = vsyncpa [#allocation3], 0  ;;  %s762_s0 = inlined_call_operand.hbm [shape: f32[1,1,32], index: 0, kind: input, shape index: {}]   ;;  %s763_s1 = inlined_call_operand.hbm [shape: f32[32,32], index: 1, kind: input, shape index: {}]   ;;  %s764_s2 = inlined_call_operand.hbm [shape: f32[1,32], index: 2, kind: input, shape index: {}]   ;;  %s765_s3 = inlined_call_operand.vmem [shape: f32[32,32], index: 3, kind: input, shape index: {}]   ;;  %s766_s4 = inlined_call_operand.vmem [shape: f32[1,32], index: 4, kind: input, shape index: {}]   ;;  %s767_s5 = inlined_call_operand.hbm [shape: f32[32,32], index: 5, kind: input, shape index: {}]   ;;  %s768_s6 = inlined_call_operand.vmem [shape: f32[1,32], index: 6, kind: input, shape index: {}]   ;;  %s769_s7 = inlined_call_operand.vmem [shape: f32[9,1], index: 7, kind: input, shape index: {}]   ;;  %s770_s8 = inlined_call_operand.vmem [shape: f32[9,1], index: 8, kind: input, shape index: {}]   ;;  %s771_s9 = inlined_call_operand.vmem [shape: f32[1,9,32], index: 9, kind: output, shape index: {}]  }
   0x1   :  { %15 = vsyncpa [#allocation5], 0 }
   0x2   :  { %16 = vsyncpa [#allocation8], 0  ;;  %s606_s30 = smov [#allocation4]   ;;  %s512_s13 = scalar_lea.hbm %s763_s1, 512 }
   0x3   :  { %s32_s10 = sshll.u32 %s606_s30, 4  ;;  %p513_p0 = scmp.ne.s32.totalorder %s763_s1, %s512_s13  ;;  %s33_s10 = int_to_ptr.vmem [resolvable:$true] %s32_s10 }
   0x4   :  { %p516_p1 = scmp.lt.u32.totalorder %s512_s13, %s763_s1 }
   0x6   :  { %p518_p2 = pnand %p516_p1, %p513_p0 }
   0x8   :  { %521 = shalt.err (!%p518_p2)
}
   0x9   :  { %s522_s18 = scalar_lea.vmem %s33_s10, 512  ;;  %p527_p4 = scmp.lt.s32.totalorder %s33_s10, %s33_s10 }
   0xa   :  { %p523_p3 = scmp.ne.s32.totalorder %s33_s10, %s522_s18  ;;  %p528_p5 = scmp.lt.s32.totalorder %s522_s18, %s522_s18 }
   0xc   :  { %p529_p6 = por %p528_p5, %p527_p4 }
   0xe   :  { %p530_p7 = pnand %p529_p6, %p523_p3 }
  0x10   :  { %533 = shalt.err (!%p530_p7)
}
  0x11   :  { %s607_s19 = smov 128   ;;  %s608_s20 = smov 8  }
  0x12   :  { %38 = dma.hbm_to_vmem [thread:$0]  %s763_s1, 512, %s33_s10, [#allocation5], %s607_s19, %s607_s19, %s608_s20  }
  0x13   :  { %s609_s23 = smov [#allocation2]   ;;  %s610_s25 = smov [#allocation6]  }
  0x14   :  { %s23_s24 = sshll.u32 %s609_s23, 4  ;;  %s45_s26 = sshll.u32 %s610_s25, 4  ;;  %s24_s24 = int_to_ptr.vmem [resolvable:$true] %s23_s24  ;;  %s46_s26 = int_to_ptr.vmem [resolvable:$true] %s45_s26 }
  0x15   :  { %s534_s29 = scalar_lea.hbm %s762_s0, 16 }
  0x16   :  { %p535_p8 = scmp.ne.s32.totalorder %s762_s0, %s534_s29  ;;  %p538_p9 = scmp.lt.u32.totalorder %s534_s29, %s762_s0 }
  0x18   :  { %p540_p10 = pnand %p538_p9, %p535_p8 }
  0x1a   :  { %543 = shalt.err (!%p540_p10)
}
  0x1b   :  { %s544_s1 = scalar_lea.vmem %s24_s24, 16  ;;  %s548_s10 = scalar_lea.vmem %s24_s24, 32 }
  0x1c   :  { %p545_p11 = scmp.ne.s32.totalorder %s24_s24, %s544_s1  ;;  %p549_p12 = scmp.lt.s32.totalorder %s24_s24, %s24_s24 }
  0x1d   :  { %p550_p13 = scmp.lt.s32.totalorder %s548_s10, %s544_s1 }
  0x1f   :  { %p551_p0 = por %p550_p13, %p549_p12 }
  0x21   :  { %p552_p1 = pnand %p551_p0, %p545_p11 }
  0x23   :  { %555 = shalt.err (!%p552_p1)
}
  0x24   :  { %26 = dma.hbm_to_vmem [thread:$0]  %s762_s0, 16, %s24_s24, [#allocation3]  }
  0x25   :  { %s556_s18 = scalar_lea.hbm %s764_s2, 16 }
  0x26   :  { %p557_p2 = scmp.ne.s32.totalorder %s764_s2, %s556_s18  ;;  %p560_p3 = scmp.lt.u32.totalorder %s556_s18, %s764_s2 }
  0x28   :  { %p562_p4 = pnand %p560_p3, %p557_p2 }
  0x2a   :  { %565 = shalt.err (!%p562_p4)
}
  0x2b   :  { %s566_s27 = scalar_lea.vmem %s46_s26, 16  ;;  %s570_s28 = scalar_lea.vmem %s46_s26, 32 }
  0x2c   :  { %p567_p5 = scmp.ne.s32.totalorder %s46_s26, %s566_s27  ;;  %p571_p6 = scmp.lt.s32.totalorder %s46_s26, %s46_s26 }
  0x2d   :  { %p572_p7 = scmp.lt.s32.totalorder %s570_s28, %s566_s27 }
  0x2f   :  { %p573_p8 = por %p572_p7, %p571_p6 }
  0x31   :  { %p574_p9 = pnand %p573_p8, %p567_p5 }
  0x33   :  { %577 = shalt.err (!%p574_p9)
}
  0x34   :  { %48 = dma.hbm_to_vmem [thread:$0]  %s764_s2, 16, %s46_s26, [#allocation5]  }
  0x35   :  { %s611_s29 = smov [#allocation7]   ;;  %s578_s13 = scalar_lea.hbm %s767_s5, 512 }
  0x36   :  { %s58_s30 = sshll.u32 %s611_s29, 4  ;;  %p579_p10 = scmp.ne.s32.totalorder %s767_s5, %s578_s13  ;;  %s59_s30 = int_to_ptr.vmem [resolvable:$true] %s58_s30 }
  0x37   :  { %p582_p11 = scmp.lt.u32.totalorder %s578_s13, %s767_s5 }
  0x39   :  { %p584_p12 = pnand %p582_p11, %p579_p10 }
  0x3b   :  { %587 = shalt.err (!%p584_p12)
}
  0x3c   :  { %s588_s16 = scalar_lea.vmem %s59_s30, 512  ;;  %p593_p0 = scmp.lt.s32.totalorder %s59_s30, %s59_s30 }
  0x3d   :  { %p589_p13 = scmp.ne.s32.totalorder %s59_s30, %s588_s16  ;;  %p594_p1 = scmp.lt.s32.totalorder %s588_s16, %s588_s16 }
  0x3f   :  { %p595_p2 = por %p594_p1, %p593_p0 }
  0x41   :  { %p596_p3 = pnand %p595_p2, %p589_p13 }
  0x43   :  { %599 = shalt.err (!%p596_p3)
}
  0x44   :  { %64 = dma.hbm_to_vmem [thread:$0]  %s767_s5, 512, %s59_s30, [#allocation8], %s607_s19, %s607_s19, %s608_s20  }
  0x45   :  { %600 = dma.done.wait [#allocation3], 16  }
  0x46   :  { %601 = vsyncadd [#allocation3], 4294967280 }
  0x47   :  { %602 = dma.done.wait [#allocation5], 528  }
  0x48   :  { %603 = vsyncadd [#allocation5], 4294966768 }
  0x49   :  { %604 = dma.done.wait [#allocation8], 512  }
  0x4a   :  { %605 = vsyncadd [#allocation8], 4294966784  ;;  %v612_v0 = vmov 0.0|0.0   ;;  %vm613_vm0 = vmmov 0   ;;  %v614_v1 = vmov 0.0   ;;  %v615_v2 = vmov 0  }
  0x4b   :  { %462 = vmatprep.subr.bf16.mxu0 %v612_v0  ;;  %437 = vmatprep.mubr.msk.f32.mxu0 %vm613_vm0, %v614_v1  ;;  %v85_v3 = vld [vmem:[#allocation4] sm:$0xff]  ;;  %v86_v4 = vld [vmem:[#allocation4 + $0x8] sm:$0xff]  ;;  %v87_v5 = vld [vmem:[#allocation4 + $0x10] sm:$0xff]  ;;  %vm89_vm1 = vcmask 261120   ;;  %v180_v25 = vlaneseq  ;;  %vm396_vm2 = vcmask 253952  }
  0x4c   :  { %494 = vset.pattern.permute.xlu0 %v615_v2  ;;  %495 = vset.pattern.permute.xlu1 %v615_v2  ;;  %v463_v6 = vpack.c.bf16 %v86_v4, %v85_v3  ;;  %v88_v7 = vld [vmem:[#allocation4 + $0x18] sm:$0xff]  ;;  %v168_v9 = vld [vmem:[%s769_s7 + $0x8] sm:$0x1]  ;;  %v209_v17 = vld [vmem:[%s765_s3 + $0x10] sm:$0xff] }
  0x4d   :  { %v167_v8 = vld [vmem:[%s769_s7] sm:$0xff]  ;;  %v466_v10 = vpack.c.bf16 %v88_v7, %v87_v5  ;;  %176 = vperm.xlu1 %495, %v168_v9   ;;  %v188_v12 = vld [vmem:[%s770_s8 + $0x8] sm:$0x1]  ;;  %v210_v18 = vld [vmem:[%s765_s3 + $0x18] sm:$0xff]  ;;  %v181_v27 = vshrl.u32 %v180_v25, 7 }
  0x4e   :  { %171 = vperm.xlu0 %494, %v167_v8   ;;  %464 = vmatpush3.bf16.msra.mxu0 %v463_v6  ;;  %v187_v11 = vld [vmem:[%s770_s8] sm:$0xff]  ;;  %v208_v15 = vld [vmem:[%s765_s3 + $0x8] sm:$0xff]  ;;  %v472_v19 = vpack.c.bf16 %v210_v18, %v209_v17  ;;  %v303_v45 = vld [vmem:[#allocation7 + $0x10] sm:$0xff] }
  0x4f   :  { %465 = vmatprep.subr.bf16.mxu0 %v612_v0  ;;  %v84_v13 = vld [vmem:[#allocation2] sm:$0x1]  ;;  %v83_v20 = vld [vmem:[#allocation6] sm:$0x1]  ;;  %v182_v28 = vsub.s32 0, %v181_v27  ;;  %v301_v43 = vld [vmem:[#allocation7] sm:$0xff] }
  0x50   :  { %v207_v14 = vld [vmem:[%s765_s3] sm:$0xff]  ;;  %496 = vtanh.f32 %v83_v20  ;;  %v302_v44 = vld [vmem:[#allocation7 + $0x8] sm:$0xff] }
  0x51   :  { %196 = vperm.xlu1 %495, %v188_v12   ;;  %v468_v16 = vpack.c.bf16 %v208_v15, %v207_v14  ;;  %v476_v46 = vpack.c.bf16 %v302_v44, %v301_v43  ;;  %v304_v47 = vld [vmem:[#allocation7 + $0x18] sm:$0xff] }
  0x52   :  { %191 = vperm.xlu0 %494, %v187_v11   ;;  %467 = vmatpush3.bf16.msra.mxu0 %v466_v10  ;;  %v480_v48 = vpack.c.bf16 %v304_v47, %v303_v45  ;;  %v406_v49 = vld [vmem:[%s766_s4] ss:$0 sm:$0xff] }
  0x53   :  { %469 = vmatprep.subr.bf16.mxu1 %v468_v16  ;;  %477 = vmatprep.subr.bf16.mxu0 %v476_v46  ;;  %v409_v56 = vld [vmem:[%s768_s6] ss:$0 sm:$0xff] }
  0x54   :  { %471 = vmatpush3.bf16.msra.mxu1 %v468_v16 }
  0x55   :  { %438 = vmatmul.mubr.msk.f32.vlgmr.msra.gmra.mrb[0].mxu0 %vm89_vm1, %v84_v13  ;;  %473 = vmatprep.subr.bf16.mxu1 %v472_v19 }
  0x56   :  { %479 = vmatpush3.bf16.msra.mxu0 %v476_v46 }
  0x57   :  { %481 = vmatprep.subr.bf16.mxu0 %v480_v48 }
  0x58   :  { %475 = vmatpush3.bf16.msra.mxu1 %v472_v19 }
  0x5a   :  { %v497_v24 = vpop.eup %496  ;;  %483 = vmatpush3.bf16.msra.mxu0 %v480_v48 }
  0xcc   :  { %v177_v31 = vpop.permute.xlu1 %176 }
  0xcd   :  { %v172_v30 = vpop.permute.xlu0 %171 }
  0xd0   :  { %v197_v36 = vpop.permute.xlu1 %196 }
  0xd1   :  { %v192_v35 = vpop.permute.xlu0 %191 }
 0x128   :  { %v159_v21 = vpop.f32.mrb[0].mxu0 }
 0x129   :  { %v160_v22 = vadd.f32 %v159_v21, %v83_v20  ;;  %v439_v23 = vpop.f32.mrb[1].mxu0 }
 0x12b   :  { %498 = vtanh.f32 %v160_v22 }
 0x12c   :  { %500 = vtanh.f32 %v497_v24 }
 0x135   :  { %v499_v26 = vpop.eup %498 }
 0x136   :  { %502 = vtanh.f32 %v499_v26  ;;  %v501_v29 = vpop.eup %500 }
 0x137   :  { %v183_v32 = vrot.slane %v501_v29, %v182_v28 }
 0x139   :  { %v185_v37 = vmul.f32 %v183_v32, %v172_v30  ;;  %v186_v38 = vmul.f32 %v183_v32, %v177_v31 }
 0x140   :  { %v503_v33 = vpop.eup %502 }
 0x141   :  { %v202_v34 = vrot.slane %v503_v33, %v182_v28 }
 0x143   :  { %v203_v39 = vmul.f32 %v202_v34, %v192_v35  ;;  %v204_v40 = vmul.f32 %v202_v34, %v197_v36 }
 0x145   :  { %v206_v41 = vadd.f32 %v204_v40, %v186_v38  ;;  %v205_v42 = vadd.f32 %v203_v39, %v185_v37 }
 0x147   :  { %448 = vmatprep.mubr.msk.f32.mxu1 %vm89_vm1, %v205_v42 }
 0x148   :  { %449 = vmatmul.mubr.msk.f32.vlgmr.msra.gmra.mrb[0].mxu1 %vm89_vm1, %v206_v41 }
 0x21b   :  { %v450_v50 = vpop.f32.mrb[0].mxu1 }
 0x21c   :  { %v296_v51 = vadd.f32 %v450_v50, %v406_v49  ;;  %v290_v52 = vpop.f32.mrb[1].mxu1 }
 0x21d   :  { %v291_v53 = vadd.f32 %v406_v49, %v290_v52 }
 0x21f   :  { %504 = vtanh.f32 %v291_v53 }
 0x220   :  { %506 = vtanh.f32 %v296_v51 }
 0x229   :  { %v505_v54 = vpop.eup %504 }
 0x22a   :  { %v507_v55 = vpop.eup %506  ;;  %459 = vmatprep.mubr.msk.f32.mxu0 %vm89_vm1, %v505_v54 }
 0x22b   :  { %460 = vmatmul.mubr.msk.f32.vlgmr.msra.gmra.mrb[2].mxu0 %vm89_vm1, %v507_v55 }
 0x2fe   :  { %v461_v57 = vpop.f32.mrb[2].mxu0 }
 0x2ff   :  { %v390_v58 = vadd.f32 %v461_v57, %v409_v56  ;;  %v384_v59 = vpop.f32.mrb[3].mxu0 }
 0x300   :  { %v385_v60 = vadd.f32 %v409_v56, %v384_v59 }
 0x301   :  { %508 = vtanh.f32 %v390_v58 }
 0x302   :  { %510 = vtanh.f32 %v385_v60 }
 0x30b   :  { %v509_v61 = vpop.eup %508 }
 0x30c   :  { %v511_v62 = vpop.eup %510  ;;  %397 = vst.msk [vmem:[%s771_s9 + $0x8] sm:$0x1] %vm396_vm2, %v509_v61 }
 0x30d   :  { %395 = vst.msk [vmem:[%s771_s9] sm:$0xff] %vm89_vm1, %v511_v62 }
 0x30e   :  { %402 = vsyncpa [#allocation3], 1 }
 0x30f   :  { %403 = vsyncpa [#allocation5], 1 }
 0x310   :  { %404 = vsyncpa [#allocation8], 1 }

</bundles_post_ra>
